<compile_context>
chip_gen: v7x
topology: tpu7x:2x2x1
jax: 0.10.0
libtpu: 0.0.40
codegen_flags: <defaults>
</compile_context>

<pallas_src>
import functools

import jax
import jax.numpy as jnp
from jax.experimental import pallas as pl
from jax.experimental.pallas import tpu as pltpu

_LANE = 128


def _round_up(x, m):
    return ((x + m - 1) // m) * m


def _sigmoid(z):
    # sigmoid(z) == 0.5 * tanh(0.5 * z) + 0.5 : a single EUP op per element
    # instead of exp + reciprocal.
    return 0.5 * jnp.tanh(0.5 * z) + 0.5


def _mlp_kernel(x_ref, w1_ref, b1_ref, w2_ref, b2_ref, w3_ref, b3_ref, o_ref):
    x = x_ref[...]

    # block1: Linear(F, F//8) + Sigmoid (+ Dropout == identity in eval)
    h1 = _sigmoid(jnp.dot(x, w1_ref[...], preferred_element_type=jnp.float32)
                  + b1_ref[...].astype(jnp.float32))

    # block2: Linear(F//8, F//8) + Sigmoid (+ Dropout == identity in eval)
    h2 = _sigmoid(jnp.dot(h1.astype(w2_ref.dtype), w2_ref[...],
                          preferred_element_type=jnp.float32)
                  + b2_ref[...].astype(jnp.float32))

    # block3: Linear(F//8, 2F) + Sigmoid
    h3 = _sigmoid(jnp.dot(h2.astype(w3_ref.dtype), w3_ref[...],
                          preferred_element_type=jnp.float32)
                  + b3_ref[...].astype(jnp.float32))

    o_ref[...] = h3.astype(o_ref.dtype)


@functools.partial(
    jax.jit,
    static_argnames=("tm", "m_pad", "f_pad", "h_pad", "o_pad", "vmem_limit",
                     "single_buffer_weights"))
def _forward_impl(x, w1, b1, w2, b2, w3, b3, *, tm, m_pad, f_pad, h_pad, o_pad,
                  vmem_limit, single_buffer_weights):
    B, D, F = x.shape
    H = w1.shape[1]
    O = w3.shape[1]
    M = B * D

    x2 = x.reshape(M, F)
    if (m_pad, f_pad) != (M, F):
        x2 = jnp.pad(x2, ((0, m_pad - M), (0, f_pad - F)))

    # Zero padding.  The padded ROWS of W2/W3 must be zero: padded h1/h2 lanes
    # evaluate to sigmoid(0) = 0.5 and only zero weight rows keep them from
    # contaminating downstream layers.  Padded output columns are sliced off.
    w1p = jnp.pad(w1, ((0, f_pad - F), (0, h_pad - H))) if (f_pad, h_pad) != (F, H) else w1
    b1p = jnp.pad(b1, ((0, 0), (0, h_pad - H))) if h_pad != H else b1
    w2p = jnp.pad(w2, ((0, h_pad - H), (0, h_pad - H))) if h_pad != H else w2
    b2p = jnp.pad(b2, ((0, 0), (0, h_pad - H))) if h_pad != H else b2
    w3p = jnp.pad(w3, ((0, h_pad - H), (0, o_pad - O))) if (h_pad, o_pad) != (H, O) else w3
    b3p = jnp.pad(b3, ((0, 0), (0, o_pad - O))) if o_pad != O else b3

    # Weights/biases never change across row tiles (constant index_map);
    # single-buffering halves their VMEM footprint.
    wmode = dict(pipeline_mode=pl.Buffered(1)) if single_buffer_weights else {}

    itemsize = jnp.dtype(x.dtype).itemsize
    cost = pl.CostEstimate(
        flops=2 * m_pad * (f_pad * h_pad + h_pad * h_pad + h_pad * o_pad),
        transcendentals=m_pad * (2 * h_pad + o_pad),
        bytes_accessed=(m_pad * (f_pad + o_pad)
                        + f_pad * h_pad + h_pad * h_pad + h_pad * o_pad
                        + 2 * h_pad + o_pad) * itemsize,
    )

    out = pl.pallas_call(
        _mlp_kernel,
        out_shape=jax.ShapeDtypeStruct((m_pad, o_pad), x.dtype),
        grid_spec=pltpu.PrefetchScalarGridSpec(
            num_scalar_prefetch=0,
            grid=(m_pad // tm,),
            in_specs=[
                pl.BlockSpec((tm, f_pad), lambda i: (i, 0)),               # x tile
                pl.BlockSpec((f_pad, h_pad), lambda i: (0, 0), **wmode),   # W1
                pl.BlockSpec((1, h_pad), lambda i: (0, 0), **wmode),       # b1
                pl.BlockSpec((h_pad, h_pad), lambda i: (0, 0), **wmode),   # W2
                pl.BlockSpec((1, h_pad), lambda i: (0, 0), **wmode),       # b2
                pl.BlockSpec((h_pad, o_pad), lambda i: (0, 0), **wmode),   # W3
                pl.BlockSpec((1, o_pad), lambda i: (0, 0), **wmode),       # b3
            ],
            out_specs=pl.BlockSpec((tm, o_pad), lambda i: (i, 0)),
        ),
        compiler_params=pltpu.CompilerParams(
            dimension_semantics=("parallel",),
            vmem_limit_bytes=vmem_limit,
        ),
        cost_estimate=cost,
    )(x2, w1p, b1p, w2p, b2p, w3p, b3p)

    if m_pad != M or o_pad != O:
        # TODO(synk): for unaligned O this slice is an extra full HBM pass over
        # the output; a column-masked final store (or fusing the slice into the
        # downstream consumer) would remove it.
        out = out[:M, :O]
    return out.reshape(B, D, O)


def _vmem_budget_bytes():
    """~3/4 of physical per-core VMEM (~96 MiB v5e/v6e, ~48 MiB v7x)."""
    try:
        cap = int(pltpu.get_tpu_info().vmem_capacity_bytes)
    except Exception:
        cap = 64 << 20            # conservative default if the query fails
    return (cap * 3) // 4


_SINGLE_BUFFER_WEIGHTS = None     # probed on first call, then cached


def linear_encode_forward(x, params, *, tile_m=None):
    """x: [batch, detector, F] -> [batch, detector, 2F] (eval-mode forward)."""
    global _SINGLE_BUFFER_WEIGHTS
    w1, b1, w2, b2, w3, b3 = params
    B, D, F = x.shape
    H = w1.shape[1]          # F // 8
    O = w3.shape[1]          # 2 * F
    M = B * D

    itemsize = jnp.dtype(x.dtype).itemsize
    sub = max(8, 32 // itemsize)          # sublane multiple: 8 f32 / 16 bf16

    # Lane-dense padding of every matmul dimension.
    F_pad = _round_up(F, _LANE)
    H_pad = _round_up(max(H, 1), _LANE)
    O_pad = _round_up(O, _LANE)
    M_sub = _round_up(M, sub)

    budget = _vmem_budget_bytes()
    if tile_m is None:
        tile_m = 512 if itemsize >= 4 else 1024

    # Row tile: as large as requested, clamped to the rounded row count, then
    # shrunk until the (conservatively double-buffered) working set fits.
    tm = min(_round_up(tile_m, sub), M_sub)
    w_bytes = (F_pad * H_pad + H_pad * H_pad + H_pad * O_pad
               + 2 * H_pad + O_pad) * itemsize

    def fits(t):
        io_bytes = 2 * t * (F_pad + O_pad) * itemsize
        return 2 * w_bytes + io_bytes + (2 << 20) <= budget

    while tm > sub and not fits(tm):
        tm = _round_up(max(sub, tm // 2), sub)

    # Guarantee >= 2 grid steps when possible so dimension_semantics="parallel"
    # can shard rows across both v7x TensorCores (harmless on v5e/v6e).
    if M_sub <= tm and M_sub >= 2 * sub:
        tm = _round_up(-(-M_sub // 2), sub)

    M_pad = _round_up(M_sub, tm)

    vmem_limit = int(min(
        max(2 * w_bytes + 2 * tm * (F_pad + O_pad) * itemsize + (4 << 20),
            32 << 20),
        budget))

    def run(single_buffer):
        return _forward_impl(
            x, w1, b1, w2, b2, w3, b3,
            tm=tm, m_pad=M_pad, f_pad=F_pad, h_pad=H_pad, o_pad=O_pad,
            vmem_limit=vmem_limit, single_buffer_weights=single_buffer)

    if _SINGLE_BUFFER_WEIGHTS is None:
        # One-time probe: fall back to default double-buffered weight specs if
        # this jax build rejects pl.Buffered(1) for constant-index operands.
        try:
            out = jax.block_until_ready(run(True))
            _SINGLE_BUFFER_WEIGHTS = True
        except Exception:
            _SINGLE_BUFFER_WEIGHTS = False
            out = run(False)
    else:
        out = run(_SINGLE_BUFFER_WEIGHTS)
    return out


def init_params(key, feature_size, dtype=jnp.float32):
    """nn.Linear-style U(-1/sqrt(fan_in), 1/sqrt(fan_in)) init.

    Returns weights already transposed to (in, out) layout for the kernel.
    """
    F = feature_size
    H = F // 8
    O = 2 * F
    ks = jax.random.split(key, 6)

    def lin(kw, kb, fan_in, fan_out):
        bound = 1.0 / float(fan_in) ** 0.5
        w = jax.random.uniform(kw, (fan_in, fan_out), dtype, -bound, bound)
        b = jax.random.uniform(kb, (1, fan_out), dtype, -bound, bound)
        return w, b

    w1, b1 = lin(ks[0], ks[1], F, H)
    w2, b2 = lin(ks[2], ks[3], H, H)
    w3, b3 = lin(ks[4], ks[5], H, O)
    return (w1, b1, w2, b2, w3, b3)


def _reference(x, params):
    w1, b1, w2, b2, w3, b3 = params
    h1 = jax.nn.sigmoid(x @ w1 + b1)
    h2 = jax.nn.sigmoid(h1 @ w2 + b2)
    return jax.nn.sigmoid(h2 @ w3 + b3)


if __name__ == "__main__":
    key = jax.random.PRNGKey(0)

    def check(batch, detector, feature_size, ksub):
        k_x, k_p = jax.random.split(ksub)
        x = jax.random.normal(k_x, (batch, detector, feature_size), jnp.float32)
        params = init_params(k_p, feature_size)
        out = jax.block_until_ready(linear_encode_forward(x, params))
        assert out.shape == (batch, detector, 2 * feature_size), out.shape
        ref = _reference(x, params)
        err = float(jnp.max(jnp.abs(out - ref)))
        assert jnp.allclose(out, ref, atol=2e-5, rtol=2e-5), (
            "mismatch vs reference", batch, detector, feature_size, err)

    k1, k2, k3 = jax.random.split(key, 3)
    # Small shape (M=16 rows, lane-dense 2F=128) -> split into two 8-row steps.
    check(2, 8, 64, k1)
    # M=512 rows -> two 256-row tiles, no output-column padding (2F=128).
    check(4, 128, 64, k2)
    # Non-aligned rows / F / H / O (exercises every pad + slice path).
    check(3, 70, 72, k3)

    print("KERNEL_OK")
</pallas_src>

<mosaic_0001>
module attributes {stable_mosaic.version = 11 : i64} {
  func.func @_mlp_kernel(%arg0: i32, %arg1: memref<8x128xf32, #tpu.memory_space<vmem>>, %arg2: memref<128x128xf32, #tpu.memory_space<vmem>>, %arg3: memref<1x128xf32, #tpu.memory_space<vmem>>, %arg4: memref<128x128xf32, #tpu.memory_space<vmem>>, %arg5: memref<1x128xf32, #tpu.memory_space<vmem>>, %arg6: memref<128x128xf32, #tpu.memory_space<vmem>>, %arg7: memref<1x128xf32, #tpu.memory_space<vmem>>, %arg8: memref<8x128xf32, #tpu.memory_space<vmem>>) attributes {dimension_semantics = [#tpu.dimension_semantics<parallel>], iteration_bounds = array<i64: 2>, scalar_prefetch = 0 : i64, scratch_operands = 0 : i64, tpu.core_type = #tpu.core_type<tc>, window_params = [{transform_indices = @transform_0, window_bounds = array<i64: 8, 128>}, {pipeline_mode = #tpu.pipeline_mode<synchronous>, transform_indices = @transform_1, window_bounds = array<i64: 128, 128>}, {pipeline_mode = #tpu.pipeline_mode<synchronous>, transform_indices = @transform_2, window_bounds = array<i64: 1, 128>}, {pipeline_mode = #tpu.pipeline_mode<synchronous>, transform_indices = @transform_3, window_bounds = array<i64: 128, 128>}, {pipeline_mode = #tpu.pipeline_mode<synchronous>, transform_indices = @transform_4, window_bounds = array<i64: 1, 128>}, {pipeline_mode = #tpu.pipeline_mode<synchronous>, transform_indices = @transform_5, window_bounds = array<i64: 128, 128>}, {pipeline_mode = #tpu.pipeline_mode<synchronous>, transform_indices = @transform_6, window_bounds = array<i64: 1, 128>}, {transform_indices = @transform_7, window_bounds = array<i64: 8, 128>}]} {
    %c0 = arith.constant 0 : index
    %c0_0 = arith.constant 0 : index
    %0 = vector.load %arg1[%c0, %c0_0] : memref<8x128xf32, #tpu.memory_space<vmem>>, vector<8x128xf32>
    %c0_1 = arith.constant 0 : index
    %c0_2 = arith.constant 0 : index
    %1 = vector.load %arg2[%c0_1, %c0_2] : memref<128x128xf32, #tpu.memory_space<vmem>>, vector<128x128xf32>
    %cst = arith.constant dense<0.000000e+00> : vector<8x128xf32>
    %2 = tpu.matmul %0, %1, %cst {dimension_numbers = #tpu.dot_dimension_numbers<[1], [0], [0], [1], [0, 0, 1, 1], [], []>} : vector<8x128xf32>, vector<128x128xf32>, vector<8x128xf32> -> vector<8x128xf32>
    %c0_3 = arith.constant 0 : index
    %c0_4 = arith.constant 0 : index
    %3 = vector.load %arg3[%c0_3, %c0_4] : memref<1x128xf32, #tpu.memory_space<vmem>>, vector<1x128xf32>
    %4 = vector.broadcast %3 : vector<1x128xf32> to vector<8x128xf32>
    %5 = arith.addf %2, %4 : vector<8x128xf32>
    %cst_5 = arith.constant 5.000000e-01 : f32
    %6 = vector.broadcast %cst_5 : f32 to vector<8x128xf32>
    %7 = arith.mulf %6, %5 : vector<8x128xf32>
    %8 = math.tanh %7 : vector<8x128xf32>
    %cst_6 = arith.constant 5.000000e-01 : f32
    %9 = vector.broadcast %cst_6 : f32 to vector<8x128xf32>
    %10 = arith.mulf %9, %8 : vector<8x128xf32>
    %cst_7 = arith.constant 5.000000e-01 : f32
    %11 = vector.broadcast %cst_7 : f32 to vector<8x128xf32>
    %12 = arith.addf %10, %11 : vector<8x128xf32>
    %c0_8 = arith.constant 0 : index
    %c0_9 = arith.constant 0 : index
    %13 = vector.load %arg4[%c0_8, %c0_9] : memref<128x128xf32, #tpu.memory_space<vmem>>, vector<128x128xf32>
    %cst_10 = arith.constant dense<0.000000e+00> : vector<8x128xf32>
    %14 = tpu.matmul %12, %13, %cst_10 {dimension_numbers = #tpu.dot_dimension_numbers<[1], [0], [0], [1], [0, 0, 1, 1], [], []>} : vector<8x128xf32>, vector<128x128xf32>, vector<8x128xf32> -> vector<8x128xf32>
    %c0_11 = arith.constant 0 : index
    %c0_12 = arith.constant 0 : index
    %15 = vector.load %arg5[%c0_11, %c0_12] : memref<1x128xf32, #tpu.memory_space<vmem>>, vector<1x128xf32>
    %16 = vector.broadcast %15 : vector<1x128xf32> to vector<8x128xf32>
    %17 = arith.addf %14, %16 : vector<8x128xf32>
    %cst_13 = arith.constant 5.000000e-01 : f32
    %18 = vector.broadcast %cst_13 : f32 to vector<8x128xf32>
    %19 = arith.mulf %18, %17 : vector<8x128xf32>
    %20 = math.tanh %19 : vector<8x128xf32>
    %cst_14 = arith.constant 5.000000e-01 : f32
    %21 = vector.broadcast %cst_14 : f32 to vector<8x128xf32>
    %22 = arith.mulf %21, %20 : vector<8x128xf32>
    %cst_15 = arith.constant 5.000000e-01 : f32
    %23 = vector.broadcast %cst_15 : f32 to vector<8x128xf32>
    %24 = arith.addf %22, %23 : vector<8x128xf32>
    %c0_16 = arith.constant 0 : index
    %c0_17 = arith.constant 0 : index
    %25 = vector.load %arg6[%c0_16, %c0_17] : memref<128x128xf32, #tpu.memory_space<vmem>>, vector<128x128xf32>
    %cst_18 = arith.constant dense<0.000000e+00> : vector<8x128xf32>
    %26 = tpu.matmul %24, %25, %cst_18 {dimension_numbers = #tpu.dot_dimension_numbers<[1], [0], [0], [1], [0, 0, 1, 1], [], []>} : vector<8x128xf32>, vector<128x128xf32>, vector<8x128xf32> -> vector<8x128xf32>
    %c0_19 = arith.constant 0 : index
    %c0_20 = arith.constant 0 : index
    %27 = vector.load %arg7[%c0_19, %c0_20] : memref<1x128xf32, #tpu.memory_space<vmem>>, vector<1x128xf32>
    %28 = vector.broadcast %27 : vector<1x128xf32> to vector<8x128xf32>
    %29 = arith.addf %26, %28 : vector<8x128xf32>
    %cst_21 = arith.constant 5.000000e-01 : f32
    %30 = vector.broadcast %cst_21 : f32 to vector<8x128xf32>
    %31 = arith.mulf %30, %29 : vector<8x128xf32>
    %32 = math.tanh %31 : vector<8x128xf32>
    %cst_22 = arith.constant 5.000000e-01 : f32
    %33 = vector.broadcast %cst_22 : f32 to vector<8x128xf32>
    %34 = arith.mulf %33, %32 : vector<8x128xf32>
    %cst_23 = arith.constant 5.000000e-01 : f32
    %35 = vector.broadcast %cst_23 : f32 to vector<8x128xf32>
    %36 = arith.addf %34, %35 : vector<8x128xf32>
    %c0_24 = arith.constant 0 : index
    %c0_25 = arith.constant 0 : index
    %37 = vector.load %arg8[%c0_24, %c0_25] : memref<8x128xf32, #tpu.memory_space<vmem>>, vector<8x128xf32>
    tpu.vector_store %arg8[%c0_24, %c0_25], %36 {strides = array<i32>} : memref<8x128xf32, #tpu.memory_space<vmem>>, vector<8x128xf32>,
    return
  }
  func.func @transform_0(%arg0: i32) -> (i32, i32) {
    %c0_i32 = arith.constant 0 : i32
    %c0_i32_0 = arith.constant 0 : i32
    return %arg0, %c0_i32 : i32, i32
  }
  func.func @transform_1(%arg0: i32) -> (i32, i32) {
    %c0_i32 = arith.constant 0 : i32
    %c0_i32_0 = arith.constant 0 : i32
    %c0_i32_1 = arith.constant 0 : i32
    return %c0_i32, %c0_i32_0 : i32, i32
  }
  func.func @transform_2(%arg0: i32) -> (i32, i32) {
    %c0_i32 = arith.constant 0 : i32
    %c0_i32_0 = arith.constant 0 : i32
    %c0_i32_1 = arith.constant 0 : i32
    return %c0_i32, %c0_i32_0 : i32, i32
  }
  func.func @transform_3(%arg0: i32) -> (i32, i32) {
    %c0_i32 = arith.constant 0 : i32
    %c0_i32_0 = arith.constant 0 : i32
    %c0_i32_1 = arith.constant 0 : i32
    return %c0_i32, %c0_i32_0 : i32, i32
  }
  func.func @transform_4(%arg0: i32) -> (i32, i32) {
    %c0_i32 = arith.constant 0 : i32
    %c0_i32_0 = arith.constant 0 : i32
    %c0_i32_1 = arith.constant 0 : i32
    return %c0_i32, %c0_i32_0 : i32, i32
  }
  func.func @transform_5(%arg0: i32) -> (i32, i32) {
    %c0_i32 = arith.constant 0 : i32
    %c0_i32_0 = arith.constant 0 : i32
    %c0_i32_1 = arith.constant 0 : i32
    return %c0_i32, %c0_i32_0 : i32, i32
  }
  func.func @transform_6(%arg0: i32) -> (i32, i32) {
    %c0_i32 = arith.constant 0 : i32
    %c0_i32_0 = arith.constant 0 : i32
    %c0_i32_1 = arith.constant 0 : i32
    return %c0_i32, %c0_i32_0 : i32, i32
  }
  func.func @transform_7(%arg0: i32) -> (i32, i32) {
    %c0_i32 = arith.constant 0 : i32
    %c0_i32_0 = arith.constant 0 : i32
    return %arg0, %c0_i32 : i32, i32
  }
}

module attributes {stable_mosaic.version = 11 : i64} {
  func.func @_mlp_kernel(%arg0: i32, %arg1: memref<8x128xf32, #tpu.memory_space<vmem>>, %arg2: memref<128x128xf32, #tpu.memory_space<vmem>>, %arg3: memref<1x128xf32, #tpu.memory_space<vmem>>, %arg4: memref<128x128xf32, #tpu.memory_space<vmem>>, %arg5: memref<1x128xf32, #tpu.memory_space<vmem>>, %arg6: memref<128x128xf32, #tpu.memory_space<vmem>>, %arg7: memref<1x128xf32, #tpu.memory_space<vmem>>, %arg8: memref<8x128xf32, #tpu.memory_space<vmem>>) attributes {dimension_semantics = [#tpu.dimension_semantics<parallel>], iteration_bounds = array<i64: 2>, scalar_prefetch = 0 : i64, scratch_operands = 0 : i64, tpu.core_type = #tpu.core_type<tc>, window_params = [{transform_indices = @transform_0, window_bounds = array<i64: 8, 128>}, {pipeline_mode = #tpu.pipeline_mode<synchronous>, transform_indices = @transform_1, window_bounds = array<i64: 128, 128>}, {pipeline_mode = #tpu.pipeline_mode<synchronous>, transform_indices = @transform_2, window_bounds = array<i64: 1, 128>}, {pipeline_mode = #tpu.pipeline_mode<synchronous>, transform_indices = @transform_3, window_bounds = array<i64: 128, 128>}, {pipeline_mode = #tpu.pipeline_mode<synchronous>, transform_indices = @transform_4, window_bounds = array<i64: 1, 128>}, {pipeline_mode = #tpu.pipeline_mode<synchronous>, transform_indices = @transform_5, window_bounds = array<i64: 128, 128>}, {pipeline_mode = #tpu.pipeline_mode<synchronous>, transform_indices = @transform_6, window_bounds = array<i64: 1, 128>}, {transform_indices = @transform_7, window_bounds = array<i64: 8, 128>}]} {
    %c0 = arith.constant 0 : index
    %c0_0 = arith.constant 0 : index
    %0 = vector.load %arg1[%c0, %c0_0] : memref<8x128xf32, #tpu.memory_space<vmem>>, vector<8x128xf32>
    %c0_1 = arith.constant 0 : index
    %c0_2 = arith.constant 0 : index
    %1 = vector.load %arg2[%c0_1, %c0_2] : memref<128x128xf32, #tpu.memory_space<vmem>>, vector<128x128xf32>
    %cst = arith.constant dense<0.000000e+00> : vector<8x128xf32>
    %2 = tpu.matmul %0, %1, %cst {dimension_numbers = #tpu.dot_dimension_numbers<[1], [0], [0], [1], [0, 0, 1, 1], [], []>} : vector<8x128xf32>, vector<128x128xf32>, vector<8x128xf32> -> vector<8x128xf32>
    %c0_3 = arith.constant 0 : index
    %c0_4 = arith.constant 0 : index
    %3 = vector.load %arg3[%c0_3, %c0_4] : memref<1x128xf32, #tpu.memory_space<vmem>>, vector<1x128xf32>
    %4 = vector.broadcast %3 : vector<1x128xf32> to vector<8x128xf32>
    %5 = arith.addf %2, %4 : vector<8x128xf32>
    %cst_5 = arith.constant 5.000000e-01 : f32
    %6 = vector.broadcast %cst_5 : f32 to vector<8x128xf32>
    %7 = arith.mulf %6, %5 : vector<8x128xf32>
    %8 = math.tanh %7 : vector<8x128xf32>
    %cst_6 = arith.constant 5.000000e-01 : f32
    %9 = vector.broadcast %cst_6 : f32 to vector<8x128xf32>
    %10 = arith.mulf %9, %8 : vector<8x128xf32>
    %cst_7 = arith.constant 5.000000e-01 : f32
    %11 = vector.broadcast %cst_7 : f32 to vector<8x128xf32>
    %12 = arith.addf %10, %11 : vector<8x128xf32>
    %c0_8 = arith.constant 0 : index
    %c0_9 = arith.constant 0 : index
    %13 = vector.load %arg4[%c0_8, %c0_9] : memref<128x128xf32, #tpu.memory_space<vmem>>, vector<128x128xf32>
    %cst_10 = arith.constant dense<0.000000e+00> : vector<8x128xf32>
    %14 = tpu.matmul %12, %13, %cst_10 {dimension_numbers = #tpu.dot_dimension_numbers<[1], [0], [0], [1], [0, 0, 1, 1], [], []>} : vector<8x128xf32>, vector<128x128xf32>, vector<8x128xf32> -> vector<8x128xf32>
    %c0_11 = arith.constant 0 : index
    %c0_12 = arith.constant 0 : index
    %15 = vector.load %arg5[%c0_11, %c0_12] : memref<1x128xf32, #tpu.memory_space<vmem>>, vector<1x128xf32>
    %16 = vector.broadcast %15 : vector<1x128xf32> to vector<8x128xf32>
    %17 = arith.addf %14, %16 : vector<8x128xf32>
    %cst_13 = arith.constant 5.000000e-01 : f32
    %18 = vector.broadcast %cst_13 : f32 to vector<8x128xf32>
    %19 = arith.mulf %18, %17 : vector<8x128xf32>
    %20 = math.tanh %19 : vector<8x128xf32>
    %cst_14 = arith.constant 5.000000e-01 : f32
    %21 = vector.broadcast %cst_14 : f32 to vector<8x128xf32>
    %22 = arith.mulf %21, %20 : vector<8x128xf32>
    %cst_15 = arith.constant 5.000000e-01 : f32
    %23 = vector.broadcast %cst_15 : f32 to vector<8x128xf32>
    %24 = arith.addf %22, %23 : vector<8x128xf32>
    %c0_16 = arith.constant 0 : index
    %c0_17 = arith.constant 0 : index
    %25 = vector.load %arg6[%c0_16, %c0_17] : memref<128x128xf32, #tpu.memory_space<vmem>>, vector<128x128xf32>
    %cst_18 = arith.constant dense<0.000000e+00> : vector<8x128xf32>
    %26 = tpu.matmul %24, %25, %cst_18 {dimension_numbers = #tpu.dot_dimension_numbers<[1], [0], [0], [1], [0, 0, 1, 1], [], []>} : vector<8x128xf32>, vector<128x128xf32>, vector<8x128xf32> -> vector<8x128xf32>
    %c0_19 = arith.constant 0 : index
    %c0_20 = arith.constant 0 : index
    %27 = vector.load %arg7[%c0_19, %c0_20] : memref<1x128xf32, #tpu.memory_space<vmem>>, vector<1x128xf32>
    %28 = vector.broadcast %27 : vector<1x128xf32> to vector<8x128xf32>
    %29 = arith.addf %26, %28 : vector<8x128xf32>
    %cst_21 = arith.constant 5.000000e-01 : f32
    %30 = vector.broadcast %cst_21 : f32 to vector<8x128xf32>
    %31 = arith.mulf %30, %29 : vector<8x128xf32>
    %32 = math.tanh %31 : vector<8x128xf32>
    %cst_22 = arith.constant 5.000000e-01 : f32
    %33 = vector.broadcast %cst_22 : f32 to vector<8x128xf32>
    %34 = arith.mulf %33, %32 : vector<8x128xf32>
    %cst_23 = arith.constant 5.000000e-01 : f32
    %35 = vector.broadcast %cst_23 : f32 to vector<8x128xf32>
    %36 = arith.addf %34, %35 : vector<8x128xf32>
    %c0_24 = arith.constant 0 : index
    %c0_25 = arith.constant 0 : index
    %37 = vector.load %arg8[%c0_24, %c0_25] : memref<8x128xf32, #tpu.memory_space<vmem>>, vector<8x128xf32>
    tpu.vector_store %arg8[%c0_24, %c0_25], %36 {strides = array<i32>} : memref<8x128xf32, #tpu.memory_space<vmem>>, vector<8x128xf32>,
    return
  }
  func.func @transform_0(%arg0: i32) -> (i32, i32) {
    %c0_i32 = arith.constant 0 : i32
    %c0_i32_0 = arith.constant 0 : i32
    return %arg0, %c0_i32 : i32, i32
  }
  func.func @transform_1(%arg0: i32) -> (i32, i32) {
    %c0_i32 = arith.constant 0 : i32
    %c0_i32_0 = arith.constant 0 : i32
    %c0_i32_1 = arith.constant 0 : i32
    return %c0_i32, %c0_i32_0 : i32, i32
  }
  func.func @transform_2(%arg0: i32) -> (i32, i32) {
    %c0_i32 = arith.constant 0 : i32
    %c0_i32_0 = arith.constant 0 : i32
    %c0_i32_1 = arith.constant 0 : i32
    return %c0_i32, %c0_i32_0 : i32, i32
  }
  func.func @transform_3(%arg0: i32) -> (i32, i32) {
    %c0_i32 = arith.constant 0 : i32
    %c0_i32_0 = arith.constant 0 : i32
    %c0_i32_1 = arith.constant 0 : i32
    return %c0_i32, %c0_i32_0 : i32, i32
  }
  func.func @transform_4(%arg0: i32) -> (i32, i32) {
    %c0_i32 = arith.constant 0 : i32
    %c0_i32_0 = arith.constant 0 : i32
    %c0_i32_1 = arith.constant 0 : i32
    return %c0_i32, %c0_i32_0 : i32, i32
  }
  func.func @transform_5(%arg0: i32) -> (i32, i32) {
    %c0_i32 = arith.constant 0 : i32
    %c0_i32_0 = arith.constant 0 : i32
    %c0_i32_1 = arith.constant 0 : i32
    return %c0_i32, %c0_i32_0 : i32, i32
  }
  func.func @transform_6(%arg0: i32) -> (i32, i32) {
    %c0_i32 = arith.constant 0 : i32
    %c0_i32_0 = arith.constant 0 : i32
    %c0_i32_1 = arith.constant 0 : i32
    return %c0_i32, %c0_i32_0 : i32, i32
  }
  func.func @transform_7(%arg0: i32) -> (i32, i32) {
    %c0_i32 = arith.constant 0 : i32
    %c0_i32_0 = arith.constant 0 : i32
    return %arg0, %c0_i32 : i32, i32
  }
}

</mosaic_0001>

<bundles_post_ra>
// kernel: _forward_impl.1
= control target key start
LH: loop header
LB: loop body
LE: loop exit
PB: predicated region body
PF: predicated region fallthrough
CT: control target
= control target key end

     0   :  { %12 = vsyncpa [#allocation3], 0  ;;  %s1317_s0 = inlined_call_operand.vmem [shape: f32[16,128], index: 0, kind: input, shape index: {}]   ;;  %s1318_s1 = inlined_call_operand.vmem [shape: f32[128,128], index: 1, kind: input, shape index: {}]   ;;  %s1319_s2 = inlined_call_operand.vmem [shape: f32[1,128], index: 2, kind: input, shape index: {}]   ;;  %s1320_s3 = inlined_call_operand.vmem [shape: f32[128,128], index: 3, kind: input, shape index: {}]   ;;  %s1321_s4 = inlined_call_operand.vmem [shape: f32[1,128], index: 4, kind: input, shape index: {}]   ;;  %s1322_s5 = inlined_call_operand.vmem [shape: f32[128,128], index: 5, kind: input, shape index: {}]   ;;  %s1323_s6 = inlined_call_operand.vmem [shape: f32[1,128], index: 6, kind: input, shape index: {}]   ;;  %s1324_s7 = inlined_call_operand.hbm [shape: f32[16,128], index: 7, kind: output, shape index: {}]  }
   0x1   :  { %14 = vsyncpa [#allocation3 + $0x1], 0  ;;  %s1037_s24 = smov 0   ;;  %s1039_s25 = smov 0  }
   0x2   :  { %s1041_s26 = smov 0   ;;  %s1043_s27 = smov 0  }
   0x3 LB: > { %s1058_s28 = sadd.s32 4294967295, %s991_s27   ;;  %s640_s29 = sadd.s32 4294967294, %s991_s27   ;;  %s991_s27 = sphi %s1043_s27, %s1330_s27   ;;  %s987_s26 = sphi %s1041_s26, %s1329_s26   ;;  %s983_s25 = sphi %s1039_s25, %s1328_s25   ;;  %s979_s24 = sphi %s1037_s24, %s1327_s24  }
   0x4   : > { %s1062_s30 = sadd.s32 1, %s991_s27   ;;  %s179_s8 = sadd.s32 1, %s987_s26 }
   0x5   : > { %s176_s9 = ssub.s32 %s991_s27, %s1062_s30  ;;  %p189_p0 = scmp.ne.s32.totalorder %s987_s26, %s983_s25 }
   0x6   : > { %p177_p1 = scmp.eq.s32.totalorder %s176_s9, 0  ;;  %p190_p2 = scmp.eq.s32.totalorder %s1058_s28, 1 }
   0x7   : > { %p195_p3 = scmp.ne.s32.totalorder %s983_s25, %s979_s24  ;;  %p196_p4 = scmp.eq.s32.totalorder %s640_s29, 1 }
   0x8   : > { %s1073_s10 = scalar_select %p177_p1, %s987_s26, %s179_s8  }
   0x9   : > { %p1075_p5 = por %p190_p2, %p189_p0  ;;  %p1079_p6 = por %p196_p4, %p195_p3 }
   0xa   : > { %p643_p7 = scmp.ge.s32.totalorder %s991_s27, 1  ;;  %p239_p8 = scmp.lt.s32.totalorder %s991_s27, 3 }
   0xc   : > { %p240_p9 = pnand %p643_p7, %p239_p8 }
   0xd   : > { %v275_v0 = vld [vmem:[%s1318_s1] sm:$0xff] (!%p240_p9)  ;;  %v276_v1 = vld [vmem:[%s1318_s1 + $0x8] sm:$0xff] (!%p240_p9)  ;;  %v277_v2 = vld [vmem:[%s1318_s1 + $0x10] sm:$0xff] (!%p240_p9)  ;;  %v993_v3 = vmov (!%p240_p9), 0.0|0.0   ;;  %vm994_vm0 = vmmov (!%p240_p9), 0   ;;  %v995_v6 = vmov (!%p240_p9), 0.0  }
   0xe   : > { %243 = sbr.rel (%p240_p9) target bundleno = 754 (0x2f2), region = 48  ;;  %809 = vmatprep.subr.bf16.mxu0 (!%p240_p9), %v993_v3  ;;  %v810_v4 = vpack.c.bf16 (!%p240_p9), %v276_v1, %v275_v0  ;;  %v278_v5 = vld [vmem:[%s1318_s1 + $0x18] sm:$0xff] (!%p240_p9)  ;;  %736 = vmatprep.mubr.msk.f32.mxu0 (!%p240_p9), %vm994_vm0, %v995_v6  ;;  %v279_v8 = vld [vmem:[%s1318_s1 + $0x20] sm:$0xff] (!%p240_p9)  ;;  %v280_v9 = vld [vmem:[%s1318_s1 + $0x28] sm:$0xff] (!%p240_p9)  ;;  %p270_p10 = scmp.lt.s32.totalorder (!%p240_p9), %s1058_s28, 1 }
   0xf   : > { %833 = vmatprep.subr.bf16.mxu1 (!%p240_p9), %v993_v3  ;;  %771 = vmatprep.mubr.msk.f32.mxu1 (!%p240_p9), %vm994_vm0, %v995_v6  ;;  %v813_v7 = vpack.c.bf16 (!%p240_p9), %v278_v5, %v277_v2  ;;  %v372_v10 = vld [vmem:[%s1320_s3] sm:$0xff] (!%p240_p9)  ;;  %v373_v11 = vld [vmem:[%s1320_s3 + $0x8] sm:$0xff] (!%p240_p9)  ;;  %v374_v13 = vld [vmem:[%s1320_s3 + $0x10] sm:$0xff] (!%p240_p9)  ;;  %v816_v15 = vpack.c.bf16 (!%p240_p9), %v280_v9, %v279_v8  ;;  %s267_s22 = sand.u32 (!%p240_p9), 1, %s983_s25   ;;  %s650_s29 = sshll.u32 (!%p240_p9), %s1058_s28, 7 }
  0x10   : > { %811 = vmatpush3.bf16.msra.mxu0 (!%p240_p9), %v810_v4  ;;  %v834_v12 = vpack.c.bf16 (!%p240_p9), %v373_v11, %v372_v10  ;;  %v375_v14 = vld [vmem:[%s1320_s3 + $0x18] sm:$0xff] (!%p240_p9)  ;;  %v281_v16 = vld [vmem:[%s1318_s1 + $0x30] sm:$0xff] (!%p240_p9)  ;;  %v376_v19 = vld [vmem:[%s1320_s3 + $0x20] sm:$0xff] (!%p240_p9)  ;;  %s644_s23 = sshll.u32 (!%p240_p9), %s267_s22, 3  ;;  %s1275_s15 = scalar_lea.hbm (!%p240_p9), %s1324_s7, %s650_s29 }
  0x11   : > { %812 = vmatprep.subr.bf16.mxu0 (!%p240_p9), %v993_v3  ;;  %v282_v17 = vld [vmem:[%s1318_s1 + $0x38] sm:$0xff] (!%p240_p9)  ;;  %v837_v18 = vpack.c.bf16 (!%p240_p9), %v375_v14, %v374_v13  ;;  %v377_v20 = vld [vmem:[%s1320_s3 + $0x28] sm:$0xff] (!%p240_p9)  ;;  %v283_v22 = vld [vmem:[%s1318_s1 + $0x40] sm:$0xff] (!%p240_p9) }
  0x12   : > { %835 = vmatpush3.bf16.msra.mxu1 (!%p240_p9), %v834_v12  ;;  %v819_v21 = vpack.c.bf16 (!%p240_p9), %v282_v17, %v281_v16  ;;  %v284_v23 = vld [vmem:[%s1318_s1 + $0x48] sm:$0xff] (!%p240_p9)  ;;  %v840_v24 = vpack.c.bf16 (!%p240_p9), %v377_v20, %v376_v19  ;;  %v285_v26 = vld [vmem:[%s1318_s1 + $0x50] sm:$0xff] (!%p240_p9)  ;;  %v286_v27 = vld [vmem:[%s1318_s1 + $0x58] sm:$0xff] (!%p240_p9) }
  0x13   : > { %836 = vmatprep.subr.bf16.mxu1 (!%p240_p9), %v993_v3  ;;  %v822_v25 = vpack.c.bf16 (!%p240_p9), %v284_v23, %v283_v22  ;;  %v825_v28 = vpack.c.bf16 (!%p240_p9), %v286_v27, %v285_v26  ;;  %v287_v29 = vld [vmem:[%s1318_s1 + $0x60] sm:$0xff] (!%p240_p9)  ;;  %v288_v30 = vld [vmem:[%s1318_s1 + $0x68] sm:$0xff] (!%p240_p9)  ;;  %v289_v32 = vld [vmem:[%s1318_s1 + $0x70] sm:$0xff] (!%p240_p9) }
  0x14   : > { %814 = vmatpush3.bf16.msra.mxu0 (!%p240_p9), %v813_v7  ;;  %v828_v31 = vpack.c.bf16 (!%p240_p9), %v288_v30, %v287_v29  ;;  %v290_v33 = vld [vmem:[%s1318_s1 + $0x78] sm:$0xff] (!%p240_p9)  ;;  %v378_v36 = vld [vmem:[%s1320_s3 + $0x30] sm:$0xff] (!%p240_p9)  ;;  %v380_v39 = vld [vmem:[%s1320_s3 + $0x40] sm:$0xff] (!%p240_p9) }
  0x15   : > { %815 = vmatprep.subr.bf16.mxu0 %v993_v3  ;;  %s271_s8 = scalar_select %p270_p10, %s1058_s28, 1  ;;  %v831_v34 = vpack.c.bf16 %v290_v33, %v289_v32  ;;  %v379_v37 = vld [vmem:[%s1320_s3 + $0x38] sm:$0xff]  ;;  %v381_v40 = vld [vmem:[%s1320_s3 + $0x48] sm:$0xff]  ;;  %v382_v42 = vld [vmem:[%s1320_s3 + $0x50] sm:$0xff] }
  0x16   : > { %838 = vmatpush3.bf16.msra.mxu1 %v837_v18  ;;  %v843_v38 = vpack.c.bf16 %v379_v37, %v378_v36  ;;  %v846_v41 = vpack.c.bf16 %v381_v40, %v380_v39  ;;  %v383_v43 = vld [vmem:[%s1320_s3 + $0x58] sm:$0xff]  ;;  %v384_v45 = vld [vmem:[%s1320_s3 + $0x60] sm:$0xff]  ;;  %v385_v46 = vld [vmem:[%s1320_s3 + $0x68] sm:$0xff]  ;;  %s996_s28 = smov [#allocation2]  }
  0x17   : > { %839 = vmatprep.subr.bf16.mxu1 %v993_v3  ;;  %s645_s16 = sshll.u32 %s271_s8, 3  ;;  %v849_v44 = vpack.c.bf16 %v383_v43, %v382_v42  ;;  %v852_v47 = vpack.c.bf16 %v385_v46, %v384_v45  ;;  %v386_v48 = vld [vmem:[%s1320_s3 + $0x70] sm:$0xff]  ;;  %v387_v49 = vld [vmem:[%s1320_s3 + $0x78] sm:$0xff]  ;;  %v469_v51 = vld [vmem:[%s1322_s5] sm:$0xff]  ;;  %s269_s8 = scalar_lea.vmem [#allocation2], %s644_s23 }
  0x18   : > { %817 = vmatpush3.bf16.msra.mxu0 %v816_v15  ;;  %s273_s19 = scalar_lea.vmem %s1317_s0, %s645_s16  ;;  %v855_v50 = vpack.c.bf16 %v387_v49, %v386_v48  ;;  %v470_v52 = vld [vmem:[%s1322_s5 + $0x8] sm:$0xff]  ;;  %v471_v53 = vld [vmem:[%s1322_s5 + $0x10] sm:$0xff]  ;;  %v472_v55 = vld [vmem:[%s1322_s5 + $0x18] sm:$0xff]  ;;  %s581_s9 = sshll.u32 %s269_s8, 4  ;;  %s1277_s9 = int_to_ptr.vmem [resolvable:$true] %s581_s9 }
  0x19   : > { %818 = vmatprep.subr.bf16.mxu0 %v993_v3  ;;  %v274_v35 = vld [vmem:[%s273_s19] sm:$0xff]  ;;  %v858_v54 = vpack.c.bf16 %v470_v52, %v469_v51  ;;  %v861_v56 = vpack.c.bf16 %v472_v55, %v471_v53  ;;  %v474_v58 = vld [vmem:[%s1322_s5 + $0x28] sm:$0xff]  ;;  %v475_v5 = vld [vmem:[%s1322_s5 + $0x30] sm:$0xff]  ;;  %s568_s16 = scalar_lea.sflag [#allocation3], %s267_s22  ;;  %s929_s17 = scalar_lea.vmem %s1277_s9, 128 }
  0x1a   : > { %841 = vmatpush3.bf16.msra.mxu1 %v840_v24  ;;  %v473_v57 = vld [vmem:[%s1322_s5 + $0x20] sm:$0xff]  ;;  %v478_v9 = vld [vmem:[%s1322_s5 + $0x48] sm:$0xff]  ;;  %v479_v11 = vld [vmem:[%s1322_s5 + $0x50] sm:$0xff]  ;;  %p930_p11 = scmp.ne.s32.totalorder %s1277_s9, %s929_s17  ;;  %s933_s18 = sshll.u32 %s996_s28, 4  ;;  %s934_s18 = int_to_ptr.vmem [resolvable:$false] %s933_s18 }
  0x1b   : > { %842 = vmatprep.subr.bf16.mxu1 %v993_v3  ;;  %v864_v59 = vpack.c.bf16 %v474_v58, %v473_v57  ;;  %v646_v60 = vld [vmem:[%s1319_s2] ss:$0 sm:$0xff]  ;;  %v480_v12 = vld [vmem:[%s1322_s5 + $0x58] sm:$0xff]  ;;  %v482_v15 = vld [vmem:[%s1322_s5 + $0x68] sm:$0xff]  ;;  %s935_s19 = scalar_lea.vmem %s934_s18, 256  ;;  %p936_p0 = scmp.lt.s32.totalorder %s1277_s9, %s934_s18 }
  0x1c   : > { %820 = vmatpush3.bf16.msra.mxu0 %v819_v21  ;;  %v477_v8 = vld [vmem:[%s1322_s5 + $0x40] sm:$0xff]  ;;  %v873_v13 = vpack.c.bf16 %v480_v12, %v479_v11  ;;  %v483_v17 = vld [vmem:[%s1322_s5 + $0x70] sm:$0xff]  ;;  %v484_v18 = vld [vmem:[%s1322_s5 + $0x78] sm:$0xff]  ;;  %p931_p12 = pnand %p930_p11, %p1075_p5  ;;  %p937_p1 = scmp.lt.s32.totalorder %s935_s19, %s929_s17 }
  0x1d   : > { %821 = vmatprep.subr.bf16.mxu0 %v993_v3  ;;  %v870_v10 = vpack.c.bf16 %v478_v9, %v477_v8  ;;  %v481_v14 = vld [vmem:[%s1322_s5 + $0x60] sm:$0xff]  ;;  %v879_v19 = vpack.c.bf16 %v484_v18, %v483_v17 }
  0x1e   : > { %844 = vmatpush3.bf16.msra.mxu1 %v843_v38  ;;  %v876_v16 = vpack.c.bf16 %v482_v15, %v481_v14  ;;  %v647_v20 = vld [vmem:[%s1321_s4] ss:$0 sm:$0xff]  ;;  %p932_p13 = pneg %p931_p12  ;;  %p938_p2 = por %p937_p1, %p936_p0 }
  0x1f   : > { %845 = vmatprep.subr.bf16.mxu1 %v993_v3  ;;  %v648_v27 = vld [vmem:[%s1323_s6] ss:$0 sm:$0xff] }
  0x20   : > { %823 = vmatpush3.bf16.msra.mxu0 %v822_v25  ;;  %p939_p3 = pnand %p938_p2, %p932_p13 }
  0x21   : > { %824 = vmatprep.subr.bf16.mxu0 %v993_v3 }
  0x22   : > { %847 = vmatpush3.bf16.msra.mxu1 %v846_v41 }
  0x23   : > { %848 = vmatprep.subr.bf16.mxu1 %v993_v3 }
  0x24   : > { %826 = vmatpush3.bf16.msra.mxu0 %v825_v28 }
  0x25   : > { %827 = vmatprep.subr.bf16.mxu0 %v993_v3 }
  0x26   : > { %850 = vmatpush3.bf16.msra.mxu1 %v849_v44 }
  0x27   : > { %851 = vmatprep.subr.bf16.mxu1 %v993_v3 }
  0x28   : > { %829 = vmatpush3.bf16.msra.mxu0 %v828_v31 }
  0x29   : > { %830 = vmatprep.subr.bf16.mxu0 %v993_v3 }
  0x2a   : > { %853 = vmatpush3.bf16.msra.mxu1 %v852_v47 }
  0x2b   : > { %854 = vmatprep.subr.bf16.mxu1 %v993_v3 }
  0x2c   : > { %832 = vmatpush3.bf16.msra.mxu0 %v831_v34 }
  0x2d   : > { %857 = vmatprep.subr.bf16.mxu0 %v993_v3 }
  0x2e   : > { %856 = vmatpush3.bf16.msra.mxu1 %v855_v50 }
  0x2f   : > { %737 = vmatmul.mubr.f32.vlgmr.msra.gmra.mrb[0].mxu0 %v274_v35 }
  0x30   : > { %806 = vmatprep.mubr.msk.f32.mxu0 %vm994_vm0, %v995_v6  ;;  %859 = vmatpush3.bf16.msra.mxu0 %v858_v54  ;;  %v476_v6 = vld [vmem:[%s1322_s5 + $0x38] sm:$0xff] }
  0x31   : > { %860 = vmatprep.subr.bf16.mxu0 %v993_v3  ;;  %v867_v7 = vpack.c.bf16 %v476_v6, %v475_v5 }
  0x34   : > { %862 = vmatpush3.bf16.msra.mxu0 %v861_v56 }
  0x35   : > { %863 = vmatprep.subr.bf16.mxu0 %v993_v3 }
  0x38   : > { %865 = vmatpush3.bf16.msra.mxu0 %v864_v59 }
  0x39   : > { %866 = vmatprep.subr.bf16.mxu0 %v993_v3 }
  0x3c   : > { %868 = vmatpush3.bf16.msra.mxu0 %v867_v7 }
  0x3d   : > { %869 = vmatprep.subr.bf16.mxu0 %v993_v3 }
  0x40   : > { %871 = vmatpush3.bf16.msra.mxu0 %v870_v10 }
  0x41   : > { %872 = vmatprep.subr.bf16.mxu0 %v993_v3 }
  0x44   : > { %874 = vmatpush3.bf16.msra.mxu0 %v873_v13 }
  0x45   : > { %875 = vmatprep.subr.bf16.mxu0 %v993_v3 }
  0x48   : > { %877 = vmatpush3.bf16.msra.mxu0 %v876_v16 }
  0x49   : > { %878 = vmatprep.subr.bf16.mxu0 %v993_v3 }
  0x4c   : > { %880 = vmatpush3.bf16.msra.mxu0 %v879_v19 }
 0x102   : > { %v364_v61 = vpop.f32.mrb[0].mxu0 }
 0x103   : > { %v365_v62 = vadd.f32 %v646_v60, %v364_v61  ;;  %v738_v63 = vpop.f32.mrb[1].mxu0 }
 0x105   : > { %v368_v0 = vmul.f32 0.5, %v365_v62 }
 0x107   : > { %923 = vtanh.f32 %v368_v0 }
 0x111   : > { %v924_v1 = vpop.eup %923 }
 0x112   : > { %v370_v2 = vmul.f32 0.5, %v924_v1 }
 0x114   : > { %v371_v4 = vadd.f32 0.5, %v370_v2 }
 0x116   : > { %772 = vmatmul.mubr.f32.vlgmr.msra.gmra.mrb[0].mxu1 %v371_v4 }
 0x1e9   : > { %v461_v21 = vpop.f32.mrb[0].mxu1 }
 0x1ea   : > { %v462_v22 = vadd.f32 %v647_v20, %v461_v21  ;;  %v773_v23 = vpop.f32.mrb[1].mxu1 }
 0x1ec   : > { %v465_v3 = vmul.f32 0.5, %v462_v22 }
 0x1ee   : > { %925 = vtanh.f32 %v465_v3 }
 0x1f8   : > { %v926_v24 = vpop.eup %925 }
 0x1f9   : > { %v467_v25 = vmul.f32 0.5, %v926_v24 }
 0x1fb   : > { %v468_v26 = vadd.f32 0.5, %v467_v25 }
 0x1fd   : > { %807 = vmatmul.mubr.f32.vlgmr.msra.gmra.mrb[2].mxu0 %v468_v26 }
 0x2d0   : > { %v558_v28 = vpop.f32.mrb[2].mxu0 }
 0x2d1   : > { %v559_v29 = vadd.f32 %v648_v27, %v558_v28  ;;  %v808_v30 = vpop.f32.mrb[3].mxu0 }
 0x2d3   : > { %v562_v31 = vmul.f32 0.5, %v559_v29 }
 0x2d5   : > { %927 = vtanh.f32 %v562_v31 }
 0x2df   : > { %v928_v32 = vpop.eup %927 }
 0x2e0   : > { %v564_v33 = vmul.f32 0.5, %v928_v32 }
 0x2e2   : > { %v565_v34 = vadd.f32 0.5, %v564_v33 }
 0x2e4   : > { %566 = vst [vmem:[%s269_s8] sm:$0xff] %v565_v34 }
 0x2e5   : > { %942 = shalt.err (!%p939_p3)
}
 0x2e6   : > { %s943_s20 = scalar_lea.hbm %s1275_s15, 128  ;;  %s947_s23 = scalar_lea.hbm %s1324_s7, 256 }
 0x2e7   : > { %p944_p4 = scmp.ne.s32.totalorder %s1275_s15, %s943_s20  ;;  %p948_p9 = scmp.lt.u32.totalorder %s1275_s15, %s1324_s7 }
 0x2e8   : > { %p949_p10 = scmp.lt.u32.totalorder %s947_s23, %s943_s20  ;;  %p951_p12 = scmp.lt.u32.totalorder %s943_s20, %s1275_s15 }
 0x2e9   : > { %p945_p7 = pnand %p944_p4, %p1075_p5 }
 0x2ea   : > { %p950_p11 = por %p949_p10, %p948_p9 }
 0x2eb   : > { %p946_p8 = pneg %p945_p7 }
 0x2ec   : > { %p952_p13 = por %p951_p12, %p950_p11 }
 0x2ee   : > { %p953_p0 = pnand %p952_p13, %p946_p8 }
 0x2f0   : > { %956 = shalt.err (!%p953_p0)
}
 0x2f1   : > { %881 = dma.vmem_to_hbm [thread:$0]  (%p1075_p5), %s1277_s9, 128, %s1275_s15, %s568_s16  }
 0x2f2 PF: > { %p887_p1 = scmp.ge.s32.totalorder %s991_s27, 2  ;;  %s593_s13 = sand.u32 1, %s979_s24  }
 0x2f3   : > { %s594_s14 = scalar_lea.sflag [#allocation3], %s593_s13 }
 0x2f4   : > { %p884_p2 = pnand %p887_p1, %p1079_p6 }
 0x2f6   : > { %974 = dma.done.wait (!%p884_p2), %s594_s14, 128  }
 0x2f7   : > { %976 = vsyncadd (!%p884_p2), %s594_s14, 4294967168  ;;  %p17_p3 = scmp.ge.s32.totalorder %s1062_s30, 4   ;;  %s1327_s24 = smov %s983_s25 }
 0x2f8   : > { %s1328_s25 = smov %s987_s26  ;;  %s1329_s26 = smov %s1073_s10 }
 0x2f9   : > { %s1330_s27 = smov %s1062_s30  ;;  %19 = sbr.rel (!%p17_p3) target bundleno = 3 (0x3), region = 83 }
 0x300   :  { %599 = vsyncpa [#allocation3], 1 }
 0x301   :  { %601 = vsyncpa [#allocation3 + $0x1], 1 }

// kernel: _forward_impl.1
= control target key start
LH: loop header
LB: loop body
LE: loop exit
PB: predicated region body
PF: predicated region fallthrough
CT: control target
= control target key end

     0   :  { %12 = vsyncpa [#allocation3], 0  ;;  %s1317_s0 = inlined_call_operand.vmem [shape: f32[16,128], index: 0, kind: input, shape index: {}]   ;;  %s1318_s1 = inlined_call_operand.vmem [shape: f32[128,128], index: 1, kind: input, shape index: {}]   ;;  %s1319_s2 = inlined_call_operand.vmem [shape: f32[1,128], index: 2, kind: input, shape index: {}]   ;;  %s1320_s3 = inlined_call_operand.vmem [shape: f32[128,128], index: 3, kind: input, shape index: {}]   ;;  %s1321_s4 = inlined_call_operand.vmem [shape: f32[1,128], index: 4, kind: input, shape index: {}]   ;;  %s1322_s5 = inlined_call_operand.vmem [shape: f32[128,128], index: 5, kind: input, shape index: {}]   ;;  %s1323_s6 = inlined_call_operand.vmem [shape: f32[1,128], index: 6, kind: input, shape index: {}]   ;;  %s1324_s7 = inlined_call_operand.hbm [shape: f32[16,128], index: 7, kind: output, shape index: {}]  }
   0x1   :  { %14 = vsyncpa [#allocation3 + $0x1], 0  ;;  %s1037_s24 = smov 0   ;;  %s1039_s25 = smov 0  }
   0x2   :  { %s1041_s26 = smov 0   ;;  %s1043_s27 = smov 0  }
   0x3 LB: > { %s1058_s28 = sadd.s32 4294967295, %s991_s27   ;;  %s640_s29 = sadd.s32 4294967294, %s991_s27   ;;  %s991_s27 = sphi %s1043_s27, %s1330_s27   ;;  %s987_s26 = sphi %s1041_s26, %s1329_s26   ;;  %s983_s25 = sphi %s1039_s25, %s1328_s25   ;;  %s979_s24 = sphi %s1037_s24, %s1327_s24  }
   0x4   : > { %s1062_s30 = sadd.s32 1, %s991_s27   ;;  %s179_s8 = sadd.s32 1, %s987_s26 }
   0x5   : > { %s176_s9 = ssub.s32 %s991_s27, %s1062_s30  ;;  %p189_p0 = scmp.ne.s32.totalorder %s987_s26, %s983_s25 }
   0x6   : > { %p177_p1 = scmp.eq.s32.totalorder %s176_s9, 0  ;;  %p190_p2 = scmp.eq.s32.totalorder %s1058_s28, 1 }
   0x7   : > { %p195_p3 = scmp.ne.s32.totalorder %s983_s25, %s979_s24  ;;  %p196_p4 = scmp.eq.s32.totalorder %s640_s29, 1 }
   0x8   : > { %s1073_s10 = scalar_select %p177_p1, %s987_s26, %s179_s8  }
   0x9   : > { %p1075_p5 = por %p190_p2, %p189_p0  ;;  %p1079_p6 = por %p196_p4, %p195_p3 }
   0xa   : > { %p643_p7 = scmp.ge.s32.totalorder %s991_s27, 1  ;;  %p239_p8 = scmp.lt.s32.totalorder %s991_s27, 3 }
   0xc   : > { %p240_p9 = pnand %p643_p7, %p239_p8 }
   0xd   : > { %v275_v0 = vld [vmem:[%s1318_s1] sm:$0xff] (!%p240_p9)  ;;  %v276_v1 = vld [vmem:[%s1318_s1 + $0x8] sm:$0xff] (!%p240_p9)  ;;  %v277_v2 = vld [vmem:[%s1318_s1 + $0x10] sm:$0xff] (!%p240_p9)  ;;  %v993_v3 = vmov (!%p240_p9), 0.0|0.0   ;;  %vm994_vm0 = vmmov (!%p240_p9), 0   ;;  %v995_v6 = vmov (!%p240_p9), 0.0  }
   0xe   : > { %243 = sbr.rel (%p240_p9) target bundleno = 754 (0x2f2), region = 48  ;;  %809 = vmatprep.subr.bf16.mxu0 (!%p240_p9), %v993_v3  ;;  %v810_v4 = vpack.c.bf16 (!%p240_p9), %v276_v1, %v275_v0  ;;  %v278_v5 = vld [vmem:[%s1318_s1 + $0x18] sm:$0xff] (!%p240_p9)  ;;  %736 = vmatprep.mubr.msk.f32.mxu0 (!%p240_p9), %vm994_vm0, %v995_v6  ;;  %v279_v8 = vld [vmem:[%s1318_s1 + $0x20] sm:$0xff] (!%p240_p9)  ;;  %v280_v9 = vld [vmem:[%s1318_s1 + $0x28] sm:$0xff] (!%p240_p9)  ;;  %p270_p10 = scmp.lt.s32.totalorder (!%p240_p9), %s1058_s28, 1 }
   0xf   : > { %833 = vmatprep.subr.bf16.mxu1 (!%p240_p9), %v993_v3  ;;  %771 = vmatprep.mubr.msk.f32.mxu1 (!%p240_p9), %vm994_vm0, %v995_v6  ;;  %v813_v7 = vpack.c.bf16 (!%p240_p9), %v278_v5, %v277_v2  ;;  %v372_v10 = vld [vmem:[%s1320_s3] sm:$0xff] (!%p240_p9)  ;;  %v373_v11 = vld [vmem:[%s1320_s3 + $0x8] sm:$0xff] (!%p240_p9)  ;;  %v374_v13 = vld [vmem:[%s1320_s3 + $0x10] sm:$0xff] (!%p240_p9)  ;;  %v816_v15 = vpack.c.bf16 (!%p240_p9), %v280_v9, %v279_v8  ;;  %s267_s22 = sand.u32 (!%p240_p9), 1, %s983_s25   ;;  %s650_s29 = sshll.u32 (!%p240_p9), %s1058_s28, 7 }
  0x10   : > { %811 = vmatpush3.bf16.msra.mxu0 (!%p240_p9), %v810_v4  ;;  %v834_v12 = vpack.c.bf16 (!%p240_p9), %v373_v11, %v372_v10  ;;  %v375_v14 = vld [vmem:[%s1320_s3 + $0x18] sm:$0xff] (!%p240_p9)  ;;  %v281_v16 = vld [vmem:[%s1318_s1 + $0x30] sm:$0xff] (!%p240_p9)  ;;  %v376_v19 = vld [vmem:[%s1320_s3 + $0x20] sm:$0xff] (!%p240_p9)  ;;  %s644_s23 = sshll.u32 (!%p240_p9), %s267_s22, 3  ;;  %s1275_s15 = scalar_lea.hbm (!%p240_p9), %s1324_s7, %s650_s29 }
  0x11   : > { %812 = vmatprep.subr.bf16.mxu0 (!%p240_p9), %v993_v3  ;;  %v282_v17 = vld [vmem:[%s1318_s1 + $0x38] sm:$0xff] (!%p240_p9)  ;;  %v837_v18 = vpack.c.bf16 (!%p240_p9), %v375_v14, %v374_v13  ;;  %v377_v20 = vld [vmem:[%s1320_s3 + $0x28] sm:$0xff] (!%p240_p9)  ;;  %v283_v22 = vld [vmem:[%s1318_s1 + $0x40] sm:$0xff] (!%p240_p9) }
  0x12   : > { %835 = vmatpush3.bf16.msra.mxu1 (!%p240_p9), %v834_v12  ;;  %v819_v21 = vpack.c.bf16 (!%p240_p9), %v282_v17, %v281_v16  ;;  %v284_v23 = vld [vmem:[%s1318_s1 + $0x48] sm:$0xff] (!%p240_p9)  ;;  %v840_v24 = vpack.c.bf16 (!%p240_p9), %v377_v20, %v376_v19  ;;  %v285_v26 = vld [vmem:[%s1318_s1 + $0x50] sm:$0xff] (!%p240_p9)  ;;  %v286_v27 = vld [vmem:[%s1318_s1 + $0x58] sm:$0xff] (!%p240_p9) }
  0x13   : > { %836 = vmatprep.subr.bf16.mxu1 (!%p240_p9), %v993_v3  ;;  %v822_v25 = vpack.c.bf16 (!%p240_p9), %v284_v23, %v283_v22  ;;  %v825_v28 = vpack.c.bf16 (!%p240_p9), %v286_v27, %v285_v26  ;;  %v287_v29 = vld [vmem:[%s1318_s1 + $0x60] sm:$0xff] (!%p240_p9)  ;;  %v288_v30 = vld [vmem:[%s1318_s1 + $0x68] sm:$0xff] (!%p240_p9)  ;;  %v289_v32 = vld [vmem:[%s1318_s1 + $0x70] sm:$0xff] (!%p240_p9) }
  0x14   : > { %814 = vmatpush3.bf16.msra.mxu0 (!%p240_p9), %v813_v7  ;;  %v828_v31 = vpack.c.bf16 (!%p240_p9), %v288_v30, %v287_v29  ;;  %v290_v33 = vld [vmem:[%s1318_s1 + $0x78] sm:$0xff] (!%p240_p9)  ;;  %v378_v36 = vld [vmem:[%s1320_s3 + $0x30] sm:$0xff] (!%p240_p9)  ;;  %v380_v39 = vld [vmem:[%s1320_s3 + $0x40] sm:$0xff] (!%p240_p9) }
  0x15   : > { %815 = vmatprep.subr.bf16.mxu0 %v993_v3  ;;  %s271_s8 = scalar_select %p270_p10, %s1058_s28, 1  ;;  %v831_v34 = vpack.c.bf16 %v290_v33, %v289_v32  ;;  %v379_v37 = vld [vmem:[%s1320_s3 + $0x38] sm:$0xff]  ;;  %v381_v40 = vld [vmem:[%s1320_s3 + $0x48] sm:$0xff]  ;;  %v382_v42 = vld [vmem:[%s1320_s3 + $0x50] sm:$0xff] }
  0x16   : > { %838 = vmatpush3.bf16.msra.mxu1 %v837_v18  ;;  %v843_v38 = vpack.c.bf16 %v379_v37, %v378_v36  ;;  %v846_v41 = vpack.c.bf16 %v381_v40, %v380_v39  ;;  %v383_v43 = vld [vmem:[%s1320_s3 + $0x58] sm:$0xff]  ;;  %v384_v45 = vld [vmem:[%s1320_s3 + $0x60] sm:$0xff]  ;;  %v385_v46 = vld [vmem:[%s1320_s3 + $0x68] sm:$0xff]  ;;  %s996_s28 = smov [#allocation2]  }
  0x17   : > { %839 = vmatprep.subr.bf16.mxu1 %v993_v3  ;;  %s645_s16 = sshll.u32 %s271_s8, 3  ;;  %v849_v44 = vpack.c.bf16 %v383_v43, %v382_v42  ;;  %v852_v47 = vpack.c.bf16 %v385_v46, %v384_v45  ;;  %v386_v48 = vld [vmem:[%s1320_s3 + $0x70] sm:$0xff]  ;;  %v387_v49 = vld [vmem:[%s1320_s3 + $0x78] sm:$0xff]  ;;  %v469_v51 = vld [vmem:[%s1322_s5] sm:$0xff]  ;;  %s269_s8 = scalar_lea.vmem [#allocation2], %s644_s23 }
  0x18   : > { %817 = vmatpush3.bf16.msra.mxu0 %v816_v15  ;;  %s273_s19 = scalar_lea.vmem %s1317_s0, %s645_s16  ;;  %v855_v50 = vpack.c.bf16 %v387_v49, %v386_v48  ;;  %v470_v52 = vld [vmem:[%s1322_s5 + $0x8] sm:$0xff]  ;;  %v471_v53 = vld [vmem:[%s1322_s5 + $0x10] sm:$0xff]  ;;  %v472_v55 = vld [vmem:[%s1322_s5 + $0x18] sm:$0xff]  ;;  %s581_s9 = sshll.u32 %s269_s8, 4  ;;  %s1277_s9 = int_to_ptr.vmem [resolvable:$true] %s581_s9 }
  0x19   : > { %818 = vmatprep.subr.bf16.mxu0 %v993_v3  ;;  %v274_v35 = vld [vmem:[%s273_s19] sm:$0xff]  ;;  %v858_v54 = vpack.c.bf16 %v470_v52, %v469_v51  ;;  %v861_v56 = vpack.c.bf16 %v472_v55, %v471_v53  ;;  %v474_v58 = vld [vmem:[%s1322_s5 + $0x28] sm:$0xff]  ;;  %v475_v5 = vld [vmem:[%s1322_s5 + $0x30] sm:$0xff]  ;;  %s568_s16 = scalar_lea.sflag [#allocation3], %s267_s22  ;;  %s929_s17 = scalar_lea.vmem %s1277_s9, 128 }
  0x1a   : > { %841 = vmatpush3.bf16.msra.mxu1 %v840_v24  ;;  %v473_v57 = vld [vmem:[%s1322_s5 + $0x20] sm:$0xff]  ;;  %v478_v9 = vld [vmem:[%s1322_s5 + $0x48] sm:$0xff]  ;;  %v479_v11 = vld [vmem:[%s1322_s5 + $0x50] sm:$0xff]  ;;  %p930_p11 = scmp.ne.s32.totalorder %s1277_s9, %s929_s17  ;;  %s933_s18 = sshll.u32 %s996_s28, 4  ;;  %s934_s18 = int_to_ptr.vmem [resolvable:$false] %s933_s18 }
  0x1b   : > { %842 = vmatprep.subr.bf16.mxu1 %v993_v3  ;;  %v864_v59 = vpack.c.bf16 %v474_v58, %v473_v57  ;;  %v646_v60 = vld [vmem:[%s1319_s2] ss:$0 sm:$0xff]  ;;  %v480_v12 = vld [vmem:[%s1322_s5 + $0x58] sm:$0xff]  ;;  %v482_v15 = vld [vmem:[%s1322_s5 + $0x68] sm:$0xff]  ;;  %s935_s19 = scalar_lea.vmem %s934_s18, 256  ;;  %p936_p0 = scmp.lt.s32.totalorder %s1277_s9, %s934_s18 }
  0x1c   : > { %820 = vmatpush3.bf16.msra.mxu0 %v819_v21  ;;  %v477_v8 = vld [vmem:[%s1322_s5 + $0x40] sm:$0xff]  ;;  %v873_v13 = vpack.c.bf16 %v480_v12, %v479_v11  ;;  %v483_v17 = vld [vmem:[%s1322_s5 + $0x70] sm:$0xff]  ;;  %v484_v18 = vld [vmem:[%s1322_s5 + $0x78] sm:$0xff]  ;;  %p931_p12 = pnand %p930_p11, %p1075_p5  ;;  %p937_p1 = scmp.lt.s32.totalorder %s935_s19, %s929_s17 }
  0x1d   : > { %821 = vmatprep.subr.bf16.mxu0 %v993_v3  ;;  %v870_v10 = vpack.c.bf16 %v478_v9, %v477_v8  ;;  %v481_v14 = vld [vmem:[%s1322_s5 + $0x60] sm:$0xff]  ;;  %v879_v19 = vpack.c.bf16 %v484_v18, %v483_v17 }
  0x1e   : > { %844 = vmatpush3.bf16.msra.mxu1 %v843_v38  ;;  %v876_v16 = vpack.c.bf16 %v482_v15, %v481_v14  ;;  %v647_v20 = vld [vmem:[%s1321_s4] ss:$0 sm:$0xff]  ;;  %p932_p13 = pneg %p931_p12  ;;  %p938_p2 = por %p937_p1, %p936_p0 }
  0x1f   : > { %845 = vmatprep.subr.bf16.mxu1 %v993_v3  ;;  %v648_v27 = vld [vmem:[%s1323_s6] ss:$0 sm:$0xff] }
  0x20   : > { %823 = vmatpush3.bf16.msra.mxu0 %v822_v25  ;;  %p939_p3 = pnand %p938_p2, %p932_p13 }
  0x21   : > { %824 = vmatprep.subr.bf16.mxu0 %v993_v3 }
  0x22   : > { %847 = vmatpush3.bf16.msra.mxu1 %v846_v41 }
  0x23   : > { %848 = vmatprep.subr.bf16.mxu1 %v993_v3 }
  0x24   : > { %826 = vmatpush3.bf16.msra.mxu0 %v825_v28 }
  0x25   : > { %827 = vmatprep.subr.bf16.mxu0 %v993_v3 }
  0x26   : > { %850 = vmatpush3.bf16.msra.mxu1 %v849_v44 }
  0x27   : > { %851 = vmatprep.subr.bf16.mxu1 %v993_v3 }
  0x28   : > { %829 = vmatpush3.bf16.msra.mxu0 %v828_v31 }
  0x29   : > { %830 = vmatprep.subr.bf16.mxu0 %v993_v3 }
  0x2a   : > { %853 = vmatpush3.bf16.msra.mxu1 %v852_v47 }
  0x2b   : > { %854 = vmatprep.subr.bf16.mxu1 %v993_v3 }
  0x2c   : > { %832 = vmatpush3.bf16.msra.mxu0 %v831_v34 }
  0x2d   : > { %857 = vmatprep.subr.bf16.mxu0 %v993_v3 }
  0x2e   : > { %856 = vmatpush3.bf16.msra.mxu1 %v855_v50 }
  0x2f   : > { %737 = vmatmul.mubr.f32.vlgmr.msra.gmra.mrb[0].mxu0 %v274_v35 }
  0x30   : > { %806 = vmatprep.mubr.msk.f32.mxu0 %vm994_vm0, %v995_v6  ;;  %859 = vmatpush3.bf16.msra.mxu0 %v858_v54  ;;  %v476_v6 = vld [vmem:[%s1322_s5 + $0x38] sm:$0xff] }
  0x31   : > { %860 = vmatprep.subr.bf16.mxu0 %v993_v3  ;;  %v867_v7 = vpack.c.bf16 %v476_v6, %v475_v5 }
  0x34   : > { %862 = vmatpush3.bf16.msra.mxu0 %v861_v56 }
  0x35   : > { %863 = vmatprep.subr.bf16.mxu0 %v993_v3 }
  0x38   : > { %865 = vmatpush3.bf16.msra.mxu0 %v864_v59 }
  0x39   : > { %866 = vmatprep.subr.bf16.mxu0 %v993_v3 }
  0x3c   : > { %868 = vmatpush3.bf16.msra.mxu0 %v867_v7 }
  0x3d   : > { %869 = vmatprep.subr.bf16.mxu0 %v993_v3 }
  0x40   : > { %871 = vmatpush3.bf16.msra.mxu0 %v870_v10 }
  0x41   : > { %872 = vmatprep.subr.bf16.mxu0 %v993_v3 }
  0x44   : > { %874 = vmatpush3.bf16.msra.mxu0 %v873_v13 }
  0x45   : > { %875 = vmatprep.subr.bf16.mxu0 %v993_v3 }
  0x48   : > { %877 = vmatpush3.bf16.msra.mxu0 %v876_v16 }
  0x49   : > { %878 = vmatprep.subr.bf16.mxu0 %v993_v3 }
  0x4c   : > { %880 = vmatpush3.bf16.msra.mxu0 %v879_v19 }
 0x102   : > { %v364_v61 = vpop.f32.mrb[0].mxu0 }
 0x103   : > { %v365_v62 = vadd.f32 %v646_v60, %v364_v61  ;;  %v738_v63 = vpop.f32.mrb[1].mxu0 }
 0x105   : > { %v368_v0 = vmul.f32 0.5, %v365_v62 }
 0x107   : > { %923 = vtanh.f32 %v368_v0 }
 0x111   : > { %v924_v1 = vpop.eup %923 }
 0x112   : > { %v370_v2 = vmul.f32 0.5, %v924_v1 }
 0x114   : > { %v371_v4 = vadd.f32 0.5, %v370_v2 }
 0x116   : > { %772 = vmatmul.mubr.f32.vlgmr.msra.gmra.mrb[0].mxu1 %v371_v4 }
 0x1e9   : > { %v461_v21 = vpop.f32.mrb[0].mxu1 }
 0x1ea   : > { %v462_v22 = vadd.f32 %v647_v20, %v461_v21  ;;  %v773_v23 = vpop.f32.mrb[1].mxu1 }
 0x1ec   : > { %v465_v3 = vmul.f32 0.5, %v462_v22 }
 0x1ee   : > { %925 = vtanh.f32 %v465_v3 }
 0x1f8   : > { %v926_v24 = vpop.eup %925 }
 0x1f9   : > { %v467_v25 = vmul.f32 0.5, %v926_v24 }
 0x1fb   : > { %v468_v26 = vadd.f32 0.5, %v467_v25 }
 0x1fd   : > { %807 = vmatmul.mubr.f32.vlgmr.msra.gmra.mrb[2].mxu0 %v468_v26 }
 0x2d0   : > { %v558_v28 = vpop.f32.mrb[2].mxu0 }
 0x2d1   : > { %v559_v29 = vadd.f32 %v648_v27, %v558_v28  ;;  %v808_v30 = vpop.f32.mrb[3].mxu0 }
 0x2d3   : > { %v562_v31 = vmul.f32 0.5, %v559_v29 }
 0x2d5   : > { %927 = vtanh.f32 %v562_v31 }
 0x2df   : > { %v928_v32 = vpop.eup %927 }
 0x2e0   : > { %v564_v33 = vmul.f32 0.5, %v928_v32 }
 0x2e2   : > { %v565_v34 = vadd.f32 0.5, %v564_v33 }
 0x2e4   : > { %566 = vst [vmem:[%s269_s8] sm:$0xff] %v565_v34 }
 0x2e5   : > { %942 = shalt.err (!%p939_p3)
}
 0x2e6   : > { %s943_s20 = scalar_lea.hbm %s1275_s15, 128  ;;  %s947_s23 = scalar_lea.hbm %s1324_s7, 256 }
 0x2e7   : > { %p944_p4 = scmp.ne.s32.totalorder %s1275_s15, %s943_s20  ;;  %p948_p9 = scmp.lt.u32.totalorder %s1275_s15, %s1324_s7 }
 0x2e8   : > { %p949_p10 = scmp.lt.u32.totalorder %s947_s23, %s943_s20  ;;  %p951_p12 = scmp.lt.u32.totalorder %s943_s20, %s1275_s15 }
 0x2e9   : > { %p945_p7 = pnand %p944_p4, %p1075_p5 }
 0x2ea   : > { %p950_p11 = por %p949_p10, %p948_p9 }
 0x2eb   : > { %p946_p8 = pneg %p945_p7 }
 0x2ec   : > { %p952_p13 = por %p951_p12, %p950_p11 }
 0x2ee   : > { %p953_p0 = pnand %p952_p13, %p946_p8 }
 0x2f0   : > { %956 = shalt.err (!%p953_p0)
}
 0x2f1   : > { %881 = dma.vmem_to_hbm [thread:$0]  (%p1075_p5), %s1277_s9, 128, %s1275_s15, %s568_s16  }
 0x2f2 PF: > { %p887_p1 = scmp.ge.s32.totalorder %s991_s27, 2  ;;  %s593_s13 = sand.u32 1, %s979_s24  }
 0x2f3   : > { %s594_s14 = scalar_lea.sflag [#allocation3], %s593_s13 }
 0x2f4   : > { %p884_p2 = pnand %p887_p1, %p1079_p6 }
 0x2f6   : > { %974 = dma.done.wait (!%p884_p2), %s594_s14, 128  }
 0x2f7   : > { %976 = vsyncadd (!%p884_p2), %s594_s14, 4294967168  ;;  %p17_p3 = scmp.ge.s32.totalorder %s1062_s30, 4   ;;  %s1327_s24 = smov %s983_s25 }
 0x2f8   : > { %s1328_s25 = smov %s987_s26  ;;  %s1329_s26 = smov %s1073_s10 }
 0x2f9   : > { %s1330_s27 = smov %s1062_s30  ;;  %19 = sbr.rel (!%p17_p3) target bundleno = 3 (0x3), region = 83 }
 0x300   :  { %599 = vsyncpa [#allocation3], 1 }
 0x301   :  { %601 = vsyncpa [#allocation3 + $0x1], 1 }

</bundles_post_ra>
